<compile_context>
chip_gen: v7x
topology: tpu7x:2x2x1
jax: 0.10.0
libtpu: 0.0.40
codegen_flags: <defaults>
</compile_context>

<pallas_src>
import functools

import jax
import jax.numpy as jnp
from jax.experimental import pallas as pl
from jax.experimental.pallas import tpu as pltpu


def _round_up(x, m):
    return (x + m - 1) // m * m


def _vmem_tile_bytes(rows, cols, dtype):
    """Approx VMEM footprint of a (rows, cols) tile incl. (sublane, lane) padding."""
    itemsize = jnp.dtype(dtype).itemsize
    sublane = 8 * max(4 // itemsize, 1)  # 8 for 32-bit, 16 for 16-bit, 32 for 8-bit
    return _round_up(rows, sublane) * _round_up(cols, 128) * itemsize


def _mlp_fused_kernel(x_ref, *refs, n_layers, negative_slope):
    """Fused forward for the whole MLP on one batch tile.

    refs = (w0, b0, w1, b1, ..., w_{L-1}, b_{L-1}, o_ref)
    Weights are in the compute dtype (bf16); biases are f32; every matmul
    accumulates in f32 on the MXU. Intermediates never leave VMEM/vregs.
    """
    o_ref = refs[-1]
    param_refs = refs[:-1]

    h = x_ref[...]
    for i in range(n_layers):
        w = param_refs[2 * i][...]            # (d_in, d_out), compute dtype
        b = param_refs[2 * i + 1][...]        # (1, d_out), f32
        h = jnp.dot(h.astype(w.dtype), w, preferred_element_type=jnp.float32) + b
        if i != n_layers - 1:
            # LeakyReLU(0.2): max(h, 0.2*h) is exact for slope in (0,1); done in f32.
            h = jnp.maximum(h, negative_slope * h)

    o_ref[...] = h.astype(o_ref.dtype)


def mlp_forward(x, params, *, negative_slope=0.2, compute_dtype=jnp.bfloat16):
    """x: (N, ...) flattened to (N, -1) like the PyTorch module.

    params: list of (W, b) with W stored (in_features, out_features).
    All layers run inside a single pallas_call.
    """
    n = x.shape[0]
    h = x.reshape(n, -1)
    out_dtype = h.dtype
    in_dim = h.shape[1]
    n_layers = len(params)
    out_dim = params[-1][0].shape[1]
    out_pad = _round_up(out_dim, 128)         # lane-dense output stores

    # Stream x in the compute dtype (halves HBM traffic for f32 inputs).
    h = h.astype(compute_dtype)

    # Batch-tile selection: big batches use 256/512-row tiles (fills the
    # 256-wide MXU M dim on v6e/v7x, amortizes per-grid-step overhead) while
    # keeping >= 2 tiles so the "parallel" axis feeds both v7x TensorCores.
    # Tiny batches use one full-array block (block == full dims is legal).
    if n <= 256:
        tm = n
    else:
        tm = 512 if n >= 2048 else 256
        while tm > 128 and n < 2 * tm:
            tm //= 2
    grid_m = pl.cdiv(n, tm)                   # ragged last tile handled by Pallas

    # Flatten params: weights in compute dtype, biases in f32; pad the last
    # layer's columns with zeros up to out_pad (sliced off after the call).
    flat_params = []
    param_dims = []
    for li, (w, b) in enumerate(params):
        d_in, d_out = w.shape
        if li == n_layers - 1 and d_out != out_pad:
            w = jnp.pad(w, ((0, 0), (0, out_pad - d_out)))
            b = jnp.pad(b, (0, out_pad - d_out))
            d_out = out_pad
        flat_params.append(w.astype(compute_dtype))
        flat_params.append(b.reshape(1, d_out).astype(jnp.float32))
        param_dims.append((d_in, d_out))

    def _build_in_specs(single_buffer_weights):
        specs = [pl.BlockSpec((tm, in_dim), lambda i: (i, 0))]
        for (d_in, d_out) in param_dims:
            if single_buffer_weights:
                # Grid-invariant -> double buffering buys nothing; save VMEM.
                specs.append(pl.BlockSpec((d_in, d_out), lambda i: (0, 0),
                                          pipeline_mode=pl.Buffered(1)))
                specs.append(pl.BlockSpec((1, d_out), lambda i: (0, 0),
                                          pipeline_mode=pl.Buffered(1)))
            else:
                specs.append(pl.BlockSpec((d_in, d_out), lambda i: (0, 0)))
                specs.append(pl.BlockSpec((1, d_out), lambda i: (0, 0)))
        return specs

    # Explicit VMEM budget (lane/sublane-padded), never below the 32 MiB default.
    max_dim = max([in_dim, out_pad] + [d for _, d in param_dims])
    est = 2 * _vmem_tile_bytes(tm, in_dim, compute_dtype)        # x (double-buffered)
    est += 2 * _vmem_tile_bytes(tm, out_pad, out_dtype)          # out (double-buffered)
    for d_in, d_out in param_dims:                               # weights + biases
        est += 2 * _vmem_tile_bytes(d_in, d_out, compute_dtype)
        est += 2 * _vmem_tile_bytes(1, d_out, jnp.float32)
    est += 4 * _vmem_tile_bytes(tm, max_dim, jnp.float32)        # live intermediates
    vmem_limit = min(128 * 1024 * 1024,
                     max(int(est * 1.5) + (2 << 20), 32 * 1024 * 1024))

    kernel = functools.partial(
        _mlp_fused_kernel, n_layers=n_layers, negative_slope=negative_slope
    )

    def _run(single_buffer_weights):
        return pl.pallas_call(
            kernel,
            out_shape=jax.ShapeDtypeStruct((n, out_pad), out_dtype),
            grid_spec=pltpu.PrefetchScalarGridSpec(
                num_scalar_prefetch=0,
                grid=(grid_m,),
                in_specs=_build_in_specs(single_buffer_weights),
                out_specs=pl.BlockSpec((tm, out_pad), lambda i: (i, 0)),
            ),
            compiler_params=pltpu.CompilerParams(
                dimension_semantics=("parallel",),
                vmem_limit_bytes=vmem_limit,
            ),
        )(h, *flat_params)

    try:
        out = _run(True)      # single-buffered resident weights (VMEM saver, v7x)
    except Exception:
        out = _run(False)     # this jax/libtpu rejected Buffered(1): default specs

    return out[:, :out_dim] if out_pad != out_dim else out


def init_mlp_params(key, input_dim, output_dim, dim, n_blk):
    """Deterministic PyTorch-like (Kaiming-uniform) init. Weights stored (in, out)."""
    dims = [input_dim] + [dim] * (n_blk - 1) + [output_dim]
    params = []
    for i in range(n_blk):
        fan_in, fan_out = dims[i], dims[i + 1]
        key, kw, kb = jax.random.split(key, 3)
        bound_w = 1.0 / jnp.sqrt(fan_in)
        w = jax.random.uniform(kw, (fan_in, fan_out), jnp.float32, -bound_w, bound_w)
        b = jax.random.uniform(kb, (fan_out,), jnp.float32, -bound_w, bound_w)
        params.append((w, b))
    return params


if __name__ == "__main__":
    # Small shapes consistent with the module: x is NCHW, flattened inside.
    N, C, H, W = 2, 4, 16, 16
    input_dim = C * H * W          # 1024
    output_dim = 8
    dim = 32
    n_blk = 3                      # 1024 -> 32 (lrelu) -> 32 (lrelu) -> 8

    key = jax.random.PRNGKey(0)
    kx, kp = jax.random.split(key)
    x = jax.random.normal(kx, (N, C, H, W), jnp.float32)
    params = init_mlp_params(kp, input_dim, output_dim, dim, n_blk)

    out = mlp_forward(x, params)
    jax.block_until_ready(out)
    assert out.shape == (N, output_dim)
    assert out.dtype == x.dtype

    # Reference 1: mirrors the kernel's bf16 streaming / f32 accumulation exactly.
    hq = x.reshape(N, -1).astype(jnp.bfloat16)
    for i, (w, b) in enumerate(params):
        hq = jnp.dot(hq.astype(jnp.bfloat16), w.astype(jnp.bfloat16),
                     preferred_element_type=jnp.float32) + b
        if i != len(params) - 1:
            hq = jnp.where(hq > 0, hq, 0.2 * hq)
    assert jnp.allclose(out, hq, atol=2e-3, rtol=2e-3)

    # Reference 2: full-f32 module semantics (loose tol: bf16 streaming drift).
    hf = x.reshape(N, -1)
    for i, (w, b) in enumerate(params):
        hf = hf @ w + b
        if i != len(params) - 1:
            hf = jnp.where(hf > 0, hf, 0.2 * hf)
    assert jnp.allclose(out, hf, atol=5e-2, rtol=5e-2)

    print("KERNEL_OK")
</pallas_src>

<mosaic_0001>
module attributes {stable_mosaic.version = 11 : i64} {
  func.func @_mlp_fused_kernel(%arg0: i32, %arg1: memref<2x1024xbf16, #tpu.memory_space<vmem>>, %arg2: memref<1024x32xbf16, #tpu.memory_space<vmem>>, %arg3: memref<1x32xf32, #tpu.memory_space<vmem>>, %arg4: memref<32x32xbf16, #tpu.memory_space<vmem>>, %arg5: memref<1x32xf32, #tpu.memory_space<vmem>>, %arg6: memref<32x128xbf16, #tpu.memory_space<vmem>>, %arg7: memref<1x128xf32, #tpu.memory_space<vmem>>, %arg8: memref<2x128xf32, #tpu.memory_space<vmem>>) attributes {dimension_semantics = [#tpu.dimension_semantics<parallel>], iteration_bounds = array<i64: 1>, scalar_prefetch = 0 : i64, scratch_operands = 0 : i64, tpu.core_type = #tpu.core_type<tc>, window_params = [{transform_indices = @transform_0, window_bounds = array<i64: 2, 1024>}, {pipeline_mode = #tpu.pipeline_mode<synchronous>, transform_indices = @transform_1, window_bounds = array<i64: 1024, 32>}, {pipeline_mode = #tpu.pipeline_mode<synchronous>, transform_indices = @transform_2, window_bounds = array<i64: 1, 32>}, {pipeline_mode = #tpu.pipeline_mode<synchronous>, transform_indices = @transform_3, window_bounds = array<i64: 32, 32>}, {pipeline_mode = #tpu.pipeline_mode<synchronous>, transform_indices = @transform_4, window_bounds = array<i64: 1, 32>}, {pipeline_mode = #tpu.pipeline_mode<synchronous>, transform_indices = @transform_5, window_bounds = array<i64: 32, 128>}, {pipeline_mode = #tpu.pipeline_mode<synchronous>, transform_indices = @transform_6, window_bounds = array<i64: 1, 128>}, {transform_indices = @transform_7, window_bounds = array<i64: 2, 128>}]} {
    %c0 = arith.constant 0 : index
    %c0_0 = arith.constant 0 : index
    %0 = vector.load %arg1[%c0, %c0_0] : memref<2x1024xbf16, #tpu.memory_space<vmem>>, vector<2x1024xbf16>
    %c0_1 = arith.constant 0 : index
    %c0_2 = arith.constant 0 : index
    %1 = vector.load %arg2[%c0_1, %c0_2] : memref<1024x32xbf16, #tpu.memory_space<vmem>>, vector<1024x32xbf16>
    %c0_3 = arith.constant 0 : index
    %c0_4 = arith.constant 0 : index
    %2 = vector.load %arg3[%c0_3, %c0_4] : memref<1x32xf32, #tpu.memory_space<vmem>>, vector<1x32xf32>
    %cst = arith.constant dense<0.000000e+00> : vector<2x32xf32>
    %3 = tpu.matmul %0, %1, %cst {dimension_numbers = #tpu.dot_dimension_numbers<[1], [0], [0], [1], [0, 0, 1, 1], [], []>} : vector<2x1024xbf16>, vector<1024x32xbf16>, vector<2x32xf32> -> vector<2x32xf32>
    %4 = vector.broadcast %2 : vector<1x32xf32> to vector<2x32xf32>
    %5 = arith.addf %3, %4 : vector<2x32xf32>
    %cst_5 = arith.constant 2.000000e-01 : f32
    %6 = vector.broadcast %cst_5 : f32 to vector<2x32xf32>
    %7 = arith.mulf %6, %5 : vector<2x32xf32>
    %8 = arith.maximumf %5, %7 : vector<2x32xf32>
    %c0_6 = arith.constant 0 : index
    %c0_7 = arith.constant 0 : index
    %9 = vector.load %arg4[%c0_6, %c0_7] : memref<32x32xbf16, #tpu.memory_space<vmem>>, vector<32x32xbf16>
    %c0_8 = arith.constant 0 : index
    %c0_9 = arith.constant 0 : index
    %10 = vector.load %arg5[%c0_8, %c0_9] : memref<1x32xf32, #tpu.memory_space<vmem>>, vector<1x32xf32>
    %11 = arith.truncf %8 : vector<2x32xf32> to vector<2x32xbf16>
    %cst_10 = arith.constant dense<0.000000e+00> : vector<2x32xf32>
    %12 = tpu.matmul %11, %9, %cst_10 {dimension_numbers = #tpu.dot_dimension_numbers<[1], [0], [0], [1], [0, 0, 1, 1], [], []>} : vector<2x32xbf16>, vector<32x32xbf16>, vector<2x32xf32> -> vector<2x32xf32>
    %13 = vector.broadcast %10 : vector<1x32xf32> to vector<2x32xf32>
    %14 = arith.addf %12, %13 : vector<2x32xf32>
    %cst_11 = arith.constant 2.000000e-01 : f32
    %15 = vector.broadcast %cst_11 : f32 to vector<2x32xf32>
    %16 = arith.mulf %15, %14 : vector<2x32xf32>
    %17 = arith.maximumf %14, %16 : vector<2x32xf32>
    %c0_12 = arith.constant 0 : index
    %c0_13 = arith.constant 0 : index
    %18 = vector.load %arg6[%c0_12, %c0_13] : memref<32x128xbf16, #tpu.memory_space<vmem>>, vector<32x128xbf16>
    %c0_14 = arith.constant 0 : index
    %c0_15 = arith.constant 0 : index
    %19 = vector.load %arg7[%c0_14, %c0_15] : memref<1x128xf32, #tpu.memory_space<vmem>>, vector<1x128xf32>
    %20 = arith.truncf %17 : vector<2x32xf32> to vector<2x32xbf16>
    %cst_16 = arith.constant dense<0.000000e+00> : vector<2x128xf32>
    %21 = tpu.matmul %20, %18, %cst_16 {dimension_numbers = #tpu.dot_dimension_numbers<[1], [0], [0], [1], [0, 0, 1, 1], [], []>} : vector<2x32xbf16>, vector<32x128xbf16>, vector<2x128xf32> -> vector<2x128xf32>
    %22 = vector.broadcast %19 : vector<1x128xf32> to vector<2x128xf32>
    %23 = arith.addf %21, %22 : vector<2x128xf32>
    %c0_17 = arith.constant 0 : index
    %c0_18 = arith.constant 0 : index
    %24 = vector.load %arg8[%c0_17, %c0_18] : memref<2x128xf32, #tpu.memory_space<vmem>>, vector<2x128xf32>
    tpu.vector_store %arg8[%c0_17, %c0_18], %23 {strides = array<i32>} : memref<2x128xf32, #tpu.memory_space<vmem>>, vector<2x128xf32>,
    return
  }
  func.func @transform_0(%arg0: i32) -> (i32, i32) {
    %c0_i32 = arith.constant 0 : i32
    %c0_i32_0 = arith.constant 0 : i32
    return %arg0, %c0_i32 : i32, i32
  }
  func.func @transform_1(%arg0: i32) -> (i32, i32) {
    %c0_i32 = arith.constant 0 : i32
    %c0_i32_0 = arith.constant 0 : i32
    %c0_i32_1 = arith.constant 0 : i32
    return %c0_i32, %c0_i32_0 : i32, i32
  }
  func.func @transform_2(%arg0: i32) -> (i32, i32) {
    %c0_i32 = arith.constant 0 : i32
    %c0_i32_0 = arith.constant 0 : i32
    %c0_i32_1 = arith.constant 0 : i32
    return %c0_i32, %c0_i32_0 : i32, i32
  }
  func.func @transform_3(%arg0: i32) -> (i32, i32) {
    %c0_i32 = arith.constant 0 : i32
    %c0_i32_0 = arith.constant 0 : i32
    %c0_i32_1 = arith.constant 0 : i32
    return %c0_i32, %c0_i32_0 : i32, i32
  }
  func.func @transform_4(%arg0: i32) -> (i32, i32) {
    %c0_i32 = arith.constant 0 : i32
    %c0_i32_0 = arith.constant 0 : i32
    %c0_i32_1 = arith.constant 0 : i32
    return %c0_i32, %c0_i32_0 : i32, i32
  }
  func.func @transform_5(%arg0: i32) -> (i32, i32) {
    %c0_i32 = arith.constant 0 : i32
    %c0_i32_0 = arith.constant 0 : i32
    %c0_i32_1 = arith.constant 0 : i32
    return %c0_i32, %c0_i32_0 : i32, i32
  }
  func.func @transform_6(%arg0: i32) -> (i32, i32) {
    %c0_i32 = arith.constant 0 : i32
    %c0_i32_0 = arith.constant 0 : i32
    %c0_i32_1 = arith.constant 0 : i32
    return %c0_i32, %c0_i32_0 : i32, i32
  }
  func.func @transform_7(%arg0: i32) -> (i32, i32) {
    %c0_i32 = arith.constant 0 : i32
    %c0_i32_0 = arith.constant 0 : i32
    return %arg0, %c0_i32 : i32, i32
  }
}

module attributes {stable_mosaic.version = 11 : i64} {
  func.func @_mlp_fused_kernel(%arg0: i32, %arg1: memref<2x1024xbf16, #tpu.memory_space<vmem>>, %arg2: memref<1024x32xbf16, #tpu.memory_space<vmem>>, %arg3: memref<1x32xf32, #tpu.memory_space<vmem>>, %arg4: memref<32x32xbf16, #tpu.memory_space<vmem>>, %arg5: memref<1x32xf32, #tpu.memory_space<vmem>>, %arg6: memref<32x128xbf16, #tpu.memory_space<vmem>>, %arg7: memref<1x128xf32, #tpu.memory_space<vmem>>, %arg8: memref<2x128xf32, #tpu.memory_space<vmem>>) attributes {dimension_semantics = [#tpu.dimension_semantics<parallel>], iteration_bounds = array<i64: 1>, scalar_prefetch = 0 : i64, scratch_operands = 0 : i64, tpu.core_type = #tpu.core_type<tc>, window_params = [{transform_indices = @transform_0, window_bounds = array<i64: 2, 1024>}, {pipeline_mode = #tpu.pipeline_mode<synchronous>, transform_indices = @transform_1, window_bounds = array<i64: 1024, 32>}, {pipeline_mode = #tpu.pipeline_mode<synchronous>, transform_indices = @transform_2, window_bounds = array<i64: 1, 32>}, {pipeline_mode = #tpu.pipeline_mode<synchronous>, transform_indices = @transform_3, window_bounds = array<i64: 32, 32>}, {pipeline_mode = #tpu.pipeline_mode<synchronous>, transform_indices = @transform_4, window_bounds = array<i64: 1, 32>}, {pipeline_mode = #tpu.pipeline_mode<synchronous>, transform_indices = @transform_5, window_bounds = array<i64: 32, 128>}, {pipeline_mode = #tpu.pipeline_mode<synchronous>, transform_indices = @transform_6, window_bounds = array<i64: 1, 128>}, {transform_indices = @transform_7, window_bounds = array<i64: 2, 128>}]} {
    %c0 = arith.constant 0 : index
    %c0_0 = arith.constant 0 : index
    %0 = vector.load %arg1[%c0, %c0_0] : memref<2x1024xbf16, #tpu.memory_space<vmem>>, vector<2x1024xbf16>
    %c0_1 = arith.constant 0 : index
    %c0_2 = arith.constant 0 : index
    %1 = vector.load %arg2[%c0_1, %c0_2] : memref<1024x32xbf16, #tpu.memory_space<vmem>>, vector<1024x32xbf16>
    %c0_3 = arith.constant 0 : index
    %c0_4 = arith.constant 0 : index
    %2 = vector.load %arg3[%c0_3, %c0_4] : memref<1x32xf32, #tpu.memory_space<vmem>>, vector<1x32xf32>
    %cst = arith.constant dense<0.000000e+00> : vector<2x32xf32>
    %3 = tpu.matmul %0, %1, %cst {dimension_numbers = #tpu.dot_dimension_numbers<[1], [0], [0], [1], [0, 0, 1, 1], [], []>} : vector<2x1024xbf16>, vector<1024x32xbf16>, vector<2x32xf32> -> vector<2x32xf32>
    %4 = vector.broadcast %2 : vector<1x32xf32> to vector<2x32xf32>
    %5 = arith.addf %3, %4 : vector<2x32xf32>
    %cst_5 = arith.constant 2.000000e-01 : f32
    %6 = vector.broadcast %cst_5 : f32 to vector<2x32xf32>
    %7 = arith.mulf %6, %5 : vector<2x32xf32>
    %8 = arith.maximumf %5, %7 : vector<2x32xf32>
    %c0_6 = arith.constant 0 : index
    %c0_7 = arith.constant 0 : index
    %9 = vector.load %arg4[%c0_6, %c0_7] : memref<32x32xbf16, #tpu.memory_space<vmem>>, vector<32x32xbf16>
    %c0_8 = arith.constant 0 : index
    %c0_9 = arith.constant 0 : index
    %10 = vector.load %arg5[%c0_8, %c0_9] : memref<1x32xf32, #tpu.memory_space<vmem>>, vector<1x32xf32>
    %11 = arith.truncf %8 : vector<2x32xf32> to vector<2x32xbf16>
    %cst_10 = arith.constant dense<0.000000e+00> : vector<2x32xf32>
    %12 = tpu.matmul %11, %9, %cst_10 {dimension_numbers = #tpu.dot_dimension_numbers<[1], [0], [0], [1], [0, 0, 1, 1], [], []>} : vector<2x32xbf16>, vector<32x32xbf16>, vector<2x32xf32> -> vector<2x32xf32>
    %13 = vector.broadcast %10 : vector<1x32xf32> to vector<2x32xf32>
    %14 = arith.addf %12, %13 : vector<2x32xf32>
    %cst_11 = arith.constant 2.000000e-01 : f32
    %15 = vector.broadcast %cst_11 : f32 to vector<2x32xf32>
    %16 = arith.mulf %15, %14 : vector<2x32xf32>
    %17 = arith.maximumf %14, %16 : vector<2x32xf32>
    %c0_12 = arith.constant 0 : index
    %c0_13 = arith.constant 0 : index
    %18 = vector.load %arg6[%c0_12, %c0_13] : memref<32x128xbf16, #tpu.memory_space<vmem>>, vector<32x128xbf16>
    %c0_14 = arith.constant 0 : index
    %c0_15 = arith.constant 0 : index
    %19 = vector.load %arg7[%c0_14, %c0_15] : memref<1x128xf32, #tpu.memory_space<vmem>>, vector<1x128xf32>
    %20 = arith.truncf %17 : vector<2x32xf32> to vector<2x32xbf16>
    %cst_16 = arith.constant dense<0.000000e+00> : vector<2x128xf32>
    %21 = tpu.matmul %20, %18, %cst_16 {dimension_numbers = #tpu.dot_dimension_numbers<[1], [0], [0], [1], [0, 0, 1, 1], [], []>} : vector<2x32xbf16>, vector<32x128xbf16>, vector<2x128xf32> -> vector<2x128xf32>
    %22 = vector.broadcast %19 : vector<1x128xf32> to vector<2x128xf32>
    %23 = arith.addf %21, %22 : vector<2x128xf32>
    %c0_17 = arith.constant 0 : index
    %c0_18 = arith.constant 0 : index
    %24 = vector.load %arg8[%c0_17, %c0_18] : memref<2x128xf32, #tpu.memory_space<vmem>>, vector<2x128xf32>
    tpu.vector_store %arg8[%c0_17, %c0_18], %23 {strides = array<i32>} : memref<2x128xf32, #tpu.memory_space<vmem>>, vector<2x128xf32>,
    return
  }
  func.func @transform_0(%arg0: i32) -> (i32, i32) {
    %c0_i32 = arith.constant 0 : i32
    %c0_i32_0 = arith.constant 0 : i32
    return %arg0, %c0_i32 : i32, i32
  }
  func.func @transform_1(%arg0: i32) -> (i32, i32) {
    %c0_i32 = arith.constant 0 : i32
    %c0_i32_0 = arith.constant 0 : i32
    %c0_i32_1 = arith.constant 0 : i32
    return %c0_i32, %c0_i32_0 : i32, i32
  }
  func.func @transform_2(%arg0: i32) -> (i32, i32) {
    %c0_i32 = arith.constant 0 : i32
    %c0_i32_0 = arith.constant 0 : i32
    %c0_i32_1 = arith.constant 0 : i32
    return %c0_i32, %c0_i32_0 : i32, i32
  }
  func.func @transform_3(%arg0: i32) -> (i32, i32) {
    %c0_i32 = arith.constant 0 : i32
    %c0_i32_0 = arith.constant 0 : i32
    %c0_i32_1 = arith.constant 0 : i32
    return %c0_i32, %c0_i32_0 : i32, i32
  }
  func.func @transform_4(%arg0: i32) -> (i32, i32) {
    %c0_i32 = arith.constant 0 : i32
    %c0_i32_0 = arith.constant 0 : i32
    %c0_i32_1 = arith.constant 0 : i32
    return %c0_i32, %c0_i32_0 : i32, i32
  }
  func.func @transform_5(%arg0: i32) -> (i32, i32) {
    %c0_i32 = arith.constant 0 : i32
    %c0_i32_0 = arith.constant 0 : i32
    %c0_i32_1 = arith.constant 0 : i32
    return %c0_i32, %c0_i32_0 : i32, i32
  }
  func.func @transform_6(%arg0: i32) -> (i32, i32) {
    %c0_i32 = arith.constant 0 : i32
    %c0_i32_0 = arith.constant 0 : i32
    %c0_i32_1 = arith.constant 0 : i32
    return %c0_i32, %c0_i32_0 : i32, i32
  }
  func.func @transform_7(%arg0: i32) -> (i32, i32) {
    %c0_i32 = arith.constant 0 : i32
    %c0_i32_0 = arith.constant 0 : i32
    return %arg0, %c0_i32 : i32, i32
  }
}

</mosaic_0001>

<bundles_post_ra>
// kernel: tpu_custom_call.1
= control target key start
LH: loop header
LB: loop body
LE: loop exit
PB: predicated region body
PF: predicated region fallthrough
CT: control target
= control target key end

     0   :  { %v169_v28 = vlaneseq  ;;  %v1200_v36 = vmov 1966171168   ;;  %s1487_s0 = inlined_call_operand.vmem [shape: bf16[2,1024], index: 0, kind: input, shape index: {}]   ;;  %s1488_s1 = inlined_call_operand.vmem [shape: bf16[1024,32], index: 1, kind: input, shape index: {}]   ;;  %s1489_s2 = inlined_call_operand.vmem [shape: f32[1,32], index: 2, kind: input, shape index: {}]   ;;  %s1490_s3 = inlined_call_operand.vmem [shape: bf16[32,32], index: 3, kind: input, shape index: {}]   ;;  %s1491_s4 = inlined_call_operand.vmem [shape: f32[1,32], index: 4, kind: input, shape index: {}]   ;;  %s1492_s5 = inlined_call_operand.vmem [shape: bf16[32,128], index: 5, kind: input, shape index: {}]   ;;  %s1493_s6 = inlined_call_operand.vmem [shape: f32[1,128], index: 6, kind: input, shape index: {}]   ;;  %s1494_s7 = inlined_call_operand.hbm [shape: f32[2,128], index: 7, kind: output, shape index: {}]  }
   0x1   :  { %v1107_v0 = vld [vmem:[%s1488_s1 + $0x40] sm:$0xff]   ;;  %v1111_v4 = vld [vmem:[%s1488_s1 + $0x48] sm:$0xff]   ;;  %v1115_v8 = vld [vmem:[%s1488_s1 + $0x50] sm:$0xff]   ;;  %v167_v37 = vunpack.c.l.s4 %v1200_v36 }
   0x2   :  { %v1108_v1 = vld [vmem:[%s1488_s1 + $0xc0] sm:$0xff]   ;;  %993 = vmatprep.subr.bf16.mxu0 %v1107_v0  ;;  %v1112_v5 = vld [vmem:[%s1488_s1 + $0xc8] sm:$0xff]   ;;  %v1116_v9 = vld [vmem:[%s1488_s1 + $0xd0] sm:$0xff]   ;;  %v170_v33 = vshrl.u32 %v169_v28, 7 }
   0x3   :  { %v1109_v2 = vld [vmem:[%s1488_s1] sm:$0xff]   ;;  %1015 = vmatprep.subr.bf16.mxu1 %v1108_v1  ;;  %v1113_v6 = vld [vmem:[%s1488_s1 + $0x8] sm:$0xff]   ;;  %v1117_v10 = vld [vmem:[%s1488_s1 + $0x10] sm:$0xff]   ;;  %v168_v40 = vunpack.c.0.s8 %v167_v37 }
   0x4   :  { %v1110_v3 = vld [vmem:[%s1488_s1 + $0x80] sm:$0xff]   ;;  %994 = vmatpush3.bf16.msra.mxu0 %v1109_v2  ;;  %v1114_v7 = vld [vmem:[%s1488_s1 + $0x88] sm:$0xff]   ;;  %v1118_v11 = vld [vmem:[%s1488_s1 + $0x90] sm:$0xff]  }
   0x5   :  { %1016 = vmatpush3.bf16.msra.mxu1 %v1110_v3  ;;  %995 = vmatprep.subr.bf16.mxu0 %v1111_v4  ;;  %v1119_v12 = vld [vmem:[%s1488_s1 + $0x58] sm:$0xff]   ;;  %v1123_v16 = vld [vmem:[%s1488_s1 + $0x60] sm:$0xff]   ;;  %v1127_v20 = vld [vmem:[%s1488_s1 + $0x68] sm:$0xff]   ;;  %v1349_v41 = vsub.s32 %v168_v40, %v170_v33 }
   0x6   :  { %1017 = vmatprep.subr.bf16.mxu1 %v1112_v5  ;;  %v1120_v13 = vld [vmem:[%s1488_s1 + $0xd8] sm:$0xff]   ;;  %v1124_v17 = vld [vmem:[%s1488_s1 + $0xe0] sm:$0xff]   ;;  %v1128_v21 = vld [vmem:[%s1488_s1 + $0xe8] sm:$0xff]  }
   0x7   :  { %v1121_v14 = vld [vmem:[%s1488_s1 + $0x18] sm:$0xff]   ;;  %v1125_v18 = vld [vmem:[%s1488_s1 + $0x20] sm:$0xff]   ;;  %v1129_v22 = vld [vmem:[%s1488_s1 + $0x28] sm:$0xff]  }
   0x8   :  { %996 = vmatpush3.bf16.msra.mxu0 %v1113_v6  ;;  %v1122_v15 = vld [vmem:[%s1488_s1 + $0x98] sm:$0xff]   ;;  %v1126_v19 = vld [vmem:[%s1488_s1 + $0xa0] sm:$0xff]   ;;  %v1130_v23 = vld [vmem:[%s1488_s1 + $0xa8] sm:$0xff]  }
   0x9   :  { %1018 = vmatpush3.bf16.msra.mxu1 %v1114_v7  ;;  %997 = vmatprep.subr.bf16.mxu0 %v1115_v8  ;;  %v1131_v24 = vld [vmem:[%s1488_s1 + $0x70] sm:$0xff]   ;;  %v1135_v29 = vld [vmem:[%s1488_s1 + $0x78] sm:$0xff]   ;;  %v28_v34 = vld [vmem:[%s1487_s0] sm:$0xff] }
   0xa   :  { %1019 = vmatprep.subr.bf16.mxu1 %v1116_v9  ;;  %v1132_v25 = vld [vmem:[%s1488_s1 + $0xf0] sm:$0xff]   ;;  %v1136_v30 = vld [vmem:[%s1488_s1 + $0xf8] sm:$0xff]   ;;  %v1140_v35 = vld [vmem:[%s1488_s1 + $0x140] sm:$0xff]   ;;  %v165_v39 = vcombine.high %v28_v34, %v28_v34  ;;  %v172_v42 = vrot.slane %v28_v34, %v1349_v41 }
   0xb   :  { %v1133_v26 = vld [vmem:[%s1488_s1 + $0x30] sm:$0xff]   ;;  %v1137_v31 = vld [vmem:[%s1488_s1 + $0x38] sm:$0xff]   ;;  %v1141_v38 = vld [vmem:[%s1488_s1 + $0x1c0] sm:$0xff]  }
   0xc   :  { %998 = vmatpush3.bf16.msra.mxu0 %v1117_v10  ;;  %v1134_v27 = vld [vmem:[%s1488_s1 + $0xb0] sm:$0xff]   ;;  %v1138_v32 = vld [vmem:[%s1488_s1 + $0xb8] sm:$0xff]   ;;  %v1353_v43 = vrot.slane %v165_v39, %v1349_v41  ;;  %v180_v44 = vcombine.high %v172_v42, %v172_v42  ;;  %v188_v45 = vrot.slane %v172_v42, %v1349_v41  ;;  %v1142_v47 = vld [vmem:[%s1488_s1 + $0x100] sm:$0xff]  }
   0xd   :  { %1020 = vmatpush3.bf16.msra.mxu1 %v1118_v11  ;;  %999 = vmatprep.subr.bf16.mxu0 %v1119_v12  ;;  %v1143_v49 = vld [vmem:[%s1488_s1 + $0x180] sm:$0xff]   ;;  %v1144_v52 = vld [vmem:[%s1488_s1 + $0x148] sm:$0xff]   ;;  %v1148_v58 = vld [vmem:[%s1488_s1 + $0x150] sm:$0xff]  }
   0xe   :  { %1021 = vmatprep.subr.bf16.mxu1 %v1120_v13  ;;  %v181_v46 = vcombine.high %v1353_v43, %v1353_v43  ;;  %v202_v48 = vrot.slane %v180_v44, %v1349_v41  ;;  %v210_v51 = vcombine.high %v188_v45, %v188_v45  ;;  %v1145_v54 = vld [vmem:[%s1488_s1 + $0x1c8] sm:$0xff]   ;;  %v1149_v59 = vld [vmem:[%s1488_s1 + $0x1d0] sm:$0xff]   ;;  %v1152_v62 = vld [vmem:[%s1488_s1 + $0x158] sm:$0xff]  }
   0xf   :  { %v1146_v55 = vld [vmem:[%s1488_s1 + $0x108] sm:$0xff]   ;;  %v1150_v60 = vld [vmem:[%s1488_s1 + $0x110] sm:$0xff]   ;;  %v1153_v63 = vld [vmem:[%s1488_s1 + $0x1d8] sm:$0xff]  }
  0x10   :  { %1000 = vmatpush3.bf16.msra.mxu0 %v1121_v14  ;;  %v209_v50 = vrot.slane %v181_v46, %v1349_v41  ;;  %638 = vmatprep.mubr.bf16.mxu0 %v202_v48  ;;  %v212_v53 = vcombine.high %v202_v48, %v202_v48  ;;  %v1147_v57 = vld [vmem:[%s1488_s1 + $0x188] sm:$0xff]   ;;  %v1151_v61 = vld [vmem:[%s1488_s1 + $0x190] sm:$0xff]   ;;  %v1154_v0 = vld [vmem:[%s1488_s1 + $0x118] sm:$0xff]  }
  0x11   :  { %1022 = vmatpush3.bf16.msra.mxu1 %v1122_v15  ;;  %1001 = vmatprep.subr.bf16.mxu0 %v1123_v16  ;;  %v1155_v1 = vld [vmem:[%s1488_s1 + $0x198] sm:$0xff]   ;;  %v1156_v2 = vld [vmem:[%s1488_s1 + $0x160] sm:$0xff]   ;;  %v1160_v6 = vld [vmem:[%s1488_s1 + $0x168] sm:$0xff]  }
  0x12   :  { %1023 = vmatprep.subr.bf16.mxu1 %v1124_v17  ;;  %v213_v56 = vcombine.high %v209_v50, %v209_v50  ;;  %678 = vmatprep.mubr.bf16.mxu1 %v212_v53  ;;  %v1157_v3 = vld [vmem:[%s1488_s1 + $0x1e0] sm:$0xff]   ;;  %v1161_v7 = vld [vmem:[%s1488_s1 + $0x1e8] sm:$0xff]   ;;  %v1164_v10 = vld [vmem:[%s1488_s1 + $0x170] sm:$0xff]  }
  0x13   :  { %v1158_v4 = vld [vmem:[%s1488_s1 + $0x120] sm:$0xff]   ;;  %v1162_v8 = vld [vmem:[%s1488_s1 + $0x128] sm:$0xff]   ;;  %v1165_v11 = vld [vmem:[%s1488_s1 + $0x1f0] sm:$0xff]  }
  0x14   :  { %1002 = vmatpush3.bf16.msra.mxu0 %v1125_v18  ;;  %v1159_v5 = vld [vmem:[%s1488_s1 + $0x1a0] sm:$0xff]   ;;  %v1163_v9 = vld [vmem:[%s1488_s1 + $0x1a8] sm:$0xff]   ;;  %v1166_v12 = vld [vmem:[%s1488_s1 + $0x130] sm:$0xff]  }
  0x15   :  { %1024 = vmatpush3.bf16.msra.mxu1 %v1126_v19  ;;  %1003 = vmatprep.subr.bf16.mxu0 %v1127_v20 }
  0x16   :  { %1025 = vmatprep.subr.bf16.mxu1 %v1128_v21 }
  0x18   :  { %1004 = vmatpush3.bf16.msra.mxu0 %v1129_v22 }
  0x19   :  { %1026 = vmatpush3.bf16.msra.mxu1 %v1130_v23  ;;  %1005 = vmatprep.subr.bf16.mxu0 %v1131_v24 }
  0x1a   :  { %1027 = vmatprep.subr.bf16.mxu1 %v1132_v25 }
  0x1c   :  { %1006 = vmatpush3.bf16.msra.mxu0 %v1133_v26 }
  0x1d   :  { %1028 = vmatpush3.bf16.msra.mxu1 %v1134_v27  ;;  %1007 = vmatprep.subr.bf16.mxu0 %v1135_v29 }
  0x1e   :  { %1029 = vmatprep.subr.bf16.mxu1 %v1136_v30 }
  0x20   :  { %1008 = vmatpush3.bf16.msra.mxu0 %v1137_v31 }
  0x21   :  { %1030 = vmatpush3.bf16.msra.mxu1 %v1138_v32  ;;  %1037 = vmatprep.subr.bf16.mxu0 %v1140_v35 }
  0x22   :  { %1059 = vmatprep.subr.bf16.mxu1 %v1141_v38 }
  0x23   :  { %639 = vmatmul.mubr.bf16.vlgmr.msra.gmra.mrb[0].mxu0 %v188_v45 }
  0x24   :  { %1038 = vmatpush3.bf16.msra.mxu0 %v1142_v47  ;;  %679 = vmatmul.mubr.bf16.vlgmr.msra.gmra.mrb[0].mxu1 %v210_v51 }
  0x25   :  { %1039 = vmatprep.subr.bf16.mxu0 %v1144_v52  ;;  %1060 = vmatpush3.bf16.msra.mxu1 %v1143_v49 }
  0x26   :  { %718 = vmatprep.mubr.bf16.mxu0 %v209_v50  ;;  %1061 = vmatprep.subr.bf16.mxu1 %v1145_v54 }
  0x27   :  { %758 = vmatprep.mubr.bf16.mxu1 %v213_v56 }
  0x28   :  { %1040 = vmatpush3.bf16.msra.mxu0 %v1146_v55 }
  0x29   :  { %1041 = vmatprep.subr.bf16.mxu0 %v1148_v58  ;;  %1062 = vmatpush3.bf16.msra.mxu1 %v1147_v57 }
  0x2a   :  { %1063 = vmatprep.subr.bf16.mxu1 %v1149_v59 }
  0x2c   :  { %1042 = vmatpush3.bf16.msra.mxu0 %v1150_v60 }
  0x2d   :  { %1043 = vmatprep.subr.bf16.mxu0 %v1152_v62  ;;  %1064 = vmatpush3.bf16.msra.mxu1 %v1151_v61 }
  0x2e   :  { %1065 = vmatprep.subr.bf16.mxu1 %v1153_v63 }
  0x30   :  { %1044 = vmatpush3.bf16.msra.mxu0 %v1154_v0 }
  0x31   :  { %1045 = vmatprep.subr.bf16.mxu0 %v1156_v2  ;;  %1066 = vmatpush3.bf16.msra.mxu1 %v1155_v1 }
  0x32   :  { %1067 = vmatprep.subr.bf16.mxu1 %v1157_v3 }
  0x34   :  { %1046 = vmatpush3.bf16.msra.mxu0 %v1158_v4 }
  0x35   :  { %1047 = vmatprep.subr.bf16.mxu0 %v1160_v6  ;;  %1068 = vmatpush3.bf16.msra.mxu1 %v1159_v5 }
  0x36   :  { %1069 = vmatprep.subr.bf16.mxu1 %v1161_v7 }
  0x38   :  { %1048 = vmatpush3.bf16.msra.mxu0 %v1162_v8 }
  0x39   :  { %12 = vsyncpa [#allocation3], 0  ;;  %1049 = vmatprep.subr.bf16.mxu0 %v1164_v10  ;;  %v1168_v13 = vld [vmem:[%s1488_s1 + $0x178] sm:$0xff]   ;;  %1070 = vmatpush3.bf16.msra.mxu1 %v1163_v9  ;;  %v1167_v14 = vld [vmem:[%s1488_s1 + $0x1b0] sm:$0xff]   ;;  %v195_v17 = vrot.slane %v1353_v43, %v1349_v41  ;;  %v1201_v21 = vmov 0.0   ;;  %vm1202_vm0 = vmmov 0  }
  0x3a   :  { %1071 = vmatprep.subr.bf16.mxu1 %v1165_v11  ;;  %v1169_v15 = vld [vmem:[%s1488_s1 + $0x1f8] sm:$0xff]   ;;  %v1172_v20 = vld [vmem:[%s1490_s3] sm:$0xff]   ;;  %v1173_v22 = vld [vmem:[%s1490_s3 + $0x8] sm:$0xff]   ;;  %vm792_vm1 = vcmask 261120  }
  0x3b   :  { %v1170_v16 = vld [vmem:[%s1488_s1 + $0x138] sm:$0xff]   ;;  %v211_v19 = vcombine.high %v195_v17, %v195_v17  ;;  %v920_v24 = vld [vmem:[%s1489_s2] ss:$0 sm:$0xff]  ;;  %v1175_v52 = vld [vmem:[%s1492_s5 + $0x8] sm:$0xff]  }
  0x3c   :  { %1050 = vmatpush3.bf16.msra.mxu0 %v1166_v12  ;;  %v1171_v18 = vld [vmem:[%s1488_s1 + $0x1b8] sm:$0xff]   ;;  %v1174_v51 = vld [vmem:[%s1492_s5] sm:$0xff]   ;;  %s1203_s5 = smov [#allocation2]  }
  0x3d   :  { %1051 = vmatprep.subr.bf16.mxu0 %v1168_v13  ;;  %1072 = vmatpush3.bf16.msra.mxu1 %v1167_v14  ;;  %v985_v53 = vld [vmem:[%s1491_s4] ss:$0 sm:$0xff]  ;;  %s912_s24 = sshll.u32 %s1203_s5, 4  ;;  %s913_s24 = int_to_ptr.vmem [resolvable:$true] %s912_s24 }
  0x3e   :  { %1073 = vmatprep.subr.bf16.mxu1 %v1169_v15  ;;  %v989_v62 = vld [vmem:[%s1493_s6] ss:$0 sm:$0xff]  ;;  %s1176_s4 = scalar_lea.vmem %s913_s24, 32  ;;  %p1181_p1 = scmp.lt.s32.totalorder %s913_s24, %s913_s24 }
  0x3f   :  { %p1177_p0 = scmp.ne.s32.totalorder %s913_s24, %s1176_s4  ;;  %p1182_p2 = scmp.lt.s32.totalorder %s1176_s4, %s1176_s4 }
  0x40   :  { %1052 = vmatpush3.bf16.msra.mxu0 %v1170_v16 }
  0x41   :  { %1074 = vmatpush3.bf16.msra.mxu1 %v1171_v18  ;;  %1087 = vmatprep.subr.bf16.mxu0 %v1201_v21  ;;  %p1183_p3 = por %p1182_p2, %p1181_p1 }
  0x42   :  { %1095 = vmatprep.subr.bf16.mxu1 %v1201_v21 }
  0x43   :  { %719 = vmatmul.mubr.bf16.vlgmr.msra.gmra.mrb[4].mxu0 %v195_v17  ;;  %p1184_p4 = pnand %p1183_p3, %p1177_p0 }
  0x44   :  { %759 = vmatmul.mubr.bf16.vlgmr.msra.gmra.mrb[4].mxu1 %v211_v19  ;;  %1088 = vmatpush3.bf16.msra.mxu0 %v1172_v20 }
  0x45   :  { %1089 = vmatprep.subr.bf16.mxu0 %v1201_v21  ;;  %1091 = vmatprep.mubr.msk.bf16.mxu0 %vm1202_vm0, %v1201_v21 }
  0x46   :  { %1099 = vmatprep.mubr.msk.bf16.mxu1 %vm1202_vm0, %v1201_v21  ;;  %1096 = vmatpush3.bf16.msra.mxu1 %v1174_v51 }
  0x47   :  { %1097 = vmatprep.subr.bf16.mxu1 %v1201_v21 }
  0x48   :  { %1090 = vmatpush3.bf16.msra.mxu0 %v1173_v22 }
  0x4a   :  { %1098 = vmatpush3.bf16.msra.mxu1 %v1175_v52 }
  0xf6   :  { %v1009_v23 = vpop.f32.mrb[0].mxu0 }
  0xf7   :  { %v1010_v25 = vpop.f32.mrb[1].mxu0  ;;  %v1031_v26 = vpop.f32.mrb[0].mxu1 }
  0xf8   :  { %v1011_v27 = vadd.f32 %v1010_v25, %v1009_v23  ;;  %v1012_v28 = vpop.f32.mrb[2].mxu0  ;;  %v1032_v29 = vpop.f32.mrb[1].mxu1 }
  0xf9   :  { %v1013_v30 = vpop.f32.mrb[3].mxu0  ;;  %v1033_v32 = vadd.f32 %v1032_v29, %v1031_v26  ;;  %v1034_v33 = vpop.f32.mrb[2].mxu1 }
  0xfa   :  { %v641_v31 = vadd.f32 %v1011_v27, %v920_v24  ;;  %v1035_v34 = vpop.f32.mrb[3].mxu1 }
  0xfc   :  { %v681_v35 = vadd.f32 %v1033_v32, %v641_v31 }
 0x116   :  { %v1053_v36 = vpop.f32.mrb[4].mxu0 }
 0x117   :  { %v1054_v37 = vpop.f32.mrb[5].mxu0  ;;  %v1075_v38 = vpop.f32.mrb[4].mxu1 }
 0x118   :  { %v1055_v39 = vadd.f32 %v1054_v37, %v1053_v36  ;;  %v1056_v40 = vpop.f32.mrb[6].mxu0  ;;  %v1076_v41 = vpop.f32.mrb[5].mxu1 }
 0x119   :  { %v1057_v42 = vpop.f32.mrb[7].mxu0  ;;  %v1077_v44 = vadd.f32 %v1076_v41, %v1075_v38  ;;  %v1078_v45 = vpop.f32.mrb[6].mxu1 }
 0x11a   :  { %v721_v43 = vadd.f32 %v1055_v39, %v681_v35  ;;  %v1079_v46 = vpop.f32.mrb[7].mxu1 }
 0x11c   :  { %v761_v47 = vadd.f32 %v1077_v44, %v721_v43 }
 0x11e   :  { %v766_v48 = vmul.f32 0.2, %v761_v47 }
 0x120   :  { %v767_v49 = vmax.f32 %v761_v47, %v766_v48 }
 0x122   :  { %v773_v50 = vpack.c.bf16 %v767_v49, %v767_v49 }
 0x124   :  { %1092 = vmatmul.mubr.msk.bf16.vlgmr.msra.gmra.mrb[8].mxu0 %vm792_vm1, %v773_v50 }
 0x1f7   :  { %v830_v54 = vpop.f32.mrb[8].mxu0 }
 0x1f8   :  { %v831_v55 = vadd.f32 %v985_v53, %v830_v54  ;;  %v1093_v56 = vpop.f32.mrb[9].mxu0 }
 0x1f9   :  { %v833_v57 = vpop.f32.mrb[10].mxu0 }
 0x1fa   :  { %v836_v58 = vmul.f32 0.2, %v831_v55  ;;  %v1094_v59 = vpop.f32.mrb[11].mxu0 }
 0x1fc   :  { %v837_v60 = vmax.f32 %v831_v55, %v836_v58 }
 0x1fe   :  { %v843_v61 = vpack.c.bf16 %v837_v60, %v837_v60 }
 0x200   :  { %1100 = vmatmul.mubr.msk.bf16.vlgmr.msra.gmra.mrb[8].mxu1 %vm792_vm1, %v843_v61 }
 0x2d3   :  { %v899_v63 = vpop.f32.mrb[8].mxu1 }
 0x2d4   :  { %v900_v0 = vadd.f32 %v989_v62, %v899_v63  ;;  %v1101_v1 = vpop.f32.mrb[9].mxu1 }
 0x2d5   :  { %v902_v2 = vpop.f32.mrb[10].mxu1 }
 0x2d6   :  { %905 = vst [vmem:[#allocation2] sm:$0x3] %v900_v0  ;;  %v1102_v3 = vpop.f32.mrb[11].mxu1 }
 0x2d7   :  { %1187 = shalt.err (!%p1184_p4)
}
 0x2d8   :  { %s1188_s6 = scalar_lea.hbm %s1494_s7, 32 }
 0x2d9   :  { %p1189_p5 = scmp.ne.s32.totalorder %s1494_s7, %s1188_s6  ;;  %p1192_p6 = scmp.lt.u32.totalorder %s1188_s6, %s1494_s7 }
 0x2db   :  { %p1194_p7 = pnand %p1192_p6, %p1189_p5 }
 0x2dd   :  { %1197 = shalt.err (!%p1194_p7)
}
 0x2de   :  { %915 = dma.vmem_to_hbm [thread:$0]  %s913_s24, 32, %s1494_s7, [#allocation3]  }
 0x2df   :  { %1198 = dma.done.wait [#allocation3], 32  }
 0x2e0   :  { %1199 = vsyncadd [#allocation3], 4294967264 }
 0x2e1   :  { %919 = vsyncpa [#allocation3], 1 }

// kernel: tpu_custom_call.1
= control target key start
LH: loop header
LB: loop body
LE: loop exit
PB: predicated region body
PF: predicated region fallthrough
CT: control target
= control target key end

     0   :  { %v169_v28 = vlaneseq  ;;  %v1200_v36 = vmov 1966171168   ;;  %s1487_s0 = inlined_call_operand.vmem [shape: bf16[2,1024], index: 0, kind: input, shape index: {}]   ;;  %s1488_s1 = inlined_call_operand.vmem [shape: bf16[1024,32], index: 1, kind: input, shape index: {}]   ;;  %s1489_s2 = inlined_call_operand.vmem [shape: f32[1,32], index: 2, kind: input, shape index: {}]   ;;  %s1490_s3 = inlined_call_operand.vmem [shape: bf16[32,32], index: 3, kind: input, shape index: {}]   ;;  %s1491_s4 = inlined_call_operand.vmem [shape: f32[1,32], index: 4, kind: input, shape index: {}]   ;;  %s1492_s5 = inlined_call_operand.vmem [shape: bf16[32,128], index: 5, kind: input, shape index: {}]   ;;  %s1493_s6 = inlined_call_operand.vmem [shape: f32[1,128], index: 6, kind: input, shape index: {}]   ;;  %s1494_s7 = inlined_call_operand.hbm [shape: f32[2,128], index: 7, kind: output, shape index: {}]  }
   0x1   :  { %v1107_v0 = vld [vmem:[%s1488_s1 + $0x40] sm:$0xff]   ;;  %v1111_v4 = vld [vmem:[%s1488_s1 + $0x48] sm:$0xff]   ;;  %v1115_v8 = vld [vmem:[%s1488_s1 + $0x50] sm:$0xff]   ;;  %v167_v37 = vunpack.c.l.s4 %v1200_v36 }
   0x2   :  { %v1108_v1 = vld [vmem:[%s1488_s1 + $0xc0] sm:$0xff]   ;;  %993 = vmatprep.subr.bf16.mxu0 %v1107_v0  ;;  %v1112_v5 = vld [vmem:[%s1488_s1 + $0xc8] sm:$0xff]   ;;  %v1116_v9 = vld [vmem:[%s1488_s1 + $0xd0] sm:$0xff]   ;;  %v170_v33 = vshrl.u32 %v169_v28, 7 }
   0x3   :  { %v1109_v2 = vld [vmem:[%s1488_s1] sm:$0xff]   ;;  %1015 = vmatprep.subr.bf16.mxu1 %v1108_v1  ;;  %v1113_v6 = vld [vmem:[%s1488_s1 + $0x8] sm:$0xff]   ;;  %v1117_v10 = vld [vmem:[%s1488_s1 + $0x10] sm:$0xff]   ;;  %v168_v40 = vunpack.c.0.s8 %v167_v37 }
   0x4   :  { %v1110_v3 = vld [vmem:[%s1488_s1 + $0x80] sm:$0xff]   ;;  %994 = vmatpush3.bf16.msra.mxu0 %v1109_v2  ;;  %v1114_v7 = vld [vmem:[%s1488_s1 + $0x88] sm:$0xff]   ;;  %v1118_v11 = vld [vmem:[%s1488_s1 + $0x90] sm:$0xff]  }
   0x5   :  { %1016 = vmatpush3.bf16.msra.mxu1 %v1110_v3  ;;  %995 = vmatprep.subr.bf16.mxu0 %v1111_v4  ;;  %v1119_v12 = vld [vmem:[%s1488_s1 + $0x58] sm:$0xff]   ;;  %v1123_v16 = vld [vmem:[%s1488_s1 + $0x60] sm:$0xff]   ;;  %v1127_v20 = vld [vmem:[%s1488_s1 + $0x68] sm:$0xff]   ;;  %v1349_v41 = vsub.s32 %v168_v40, %v170_v33 }
   0x6   :  { %1017 = vmatprep.subr.bf16.mxu1 %v1112_v5  ;;  %v1120_v13 = vld [vmem:[%s1488_s1 + $0xd8] sm:$0xff]   ;;  %v1124_v17 = vld [vmem:[%s1488_s1 + $0xe0] sm:$0xff]   ;;  %v1128_v21 = vld [vmem:[%s1488_s1 + $0xe8] sm:$0xff]  }
   0x7   :  { %v1121_v14 = vld [vmem:[%s1488_s1 + $0x18] sm:$0xff]   ;;  %v1125_v18 = vld [vmem:[%s1488_s1 + $0x20] sm:$0xff]   ;;  %v1129_v22 = vld [vmem:[%s1488_s1 + $0x28] sm:$0xff]  }
   0x8   :  { %996 = vmatpush3.bf16.msra.mxu0 %v1113_v6  ;;  %v1122_v15 = vld [vmem:[%s1488_s1 + $0x98] sm:$0xff]   ;;  %v1126_v19 = vld [vmem:[%s1488_s1 + $0xa0] sm:$0xff]   ;;  %v1130_v23 = vld [vmem:[%s1488_s1 + $0xa8] sm:$0xff]  }
   0x9   :  { %1018 = vmatpush3.bf16.msra.mxu1 %v1114_v7  ;;  %997 = vmatprep.subr.bf16.mxu0 %v1115_v8  ;;  %v1131_v24 = vld [vmem:[%s1488_s1 + $0x70] sm:$0xff]   ;;  %v1135_v29 = vld [vmem:[%s1488_s1 + $0x78] sm:$0xff]   ;;  %v28_v34 = vld [vmem:[%s1487_s0] sm:$0xff] }
   0xa   :  { %1019 = vmatprep.subr.bf16.mxu1 %v1116_v9  ;;  %v1132_v25 = vld [vmem:[%s1488_s1 + $0xf0] sm:$0xff]   ;;  %v1136_v30 = vld [vmem:[%s1488_s1 + $0xf8] sm:$0xff]   ;;  %v1140_v35 = vld [vmem:[%s1488_s1 + $0x140] sm:$0xff]   ;;  %v165_v39 = vcombine.high %v28_v34, %v28_v34  ;;  %v172_v42 = vrot.slane %v28_v34, %v1349_v41 }
   0xb   :  { %v1133_v26 = vld [vmem:[%s1488_s1 + $0x30] sm:$0xff]   ;;  %v1137_v31 = vld [vmem:[%s1488_s1 + $0x38] sm:$0xff]   ;;  %v1141_v38 = vld [vmem:[%s1488_s1 + $0x1c0] sm:$0xff]  }
   0xc   :  { %998 = vmatpush3.bf16.msra.mxu0 %v1117_v10  ;;  %v1134_v27 = vld [vmem:[%s1488_s1 + $0xb0] sm:$0xff]   ;;  %v1138_v32 = vld [vmem:[%s1488_s1 + $0xb8] sm:$0xff]   ;;  %v1353_v43 = vrot.slane %v165_v39, %v1349_v41  ;;  %v180_v44 = vcombine.high %v172_v42, %v172_v42  ;;  %v188_v45 = vrot.slane %v172_v42, %v1349_v41  ;;  %v1142_v47 = vld [vmem:[%s1488_s1 + $0x100] sm:$0xff]  }
   0xd   :  { %1020 = vmatpush3.bf16.msra.mxu1 %v1118_v11  ;;  %999 = vmatprep.subr.bf16.mxu0 %v1119_v12  ;;  %v1143_v49 = vld [vmem:[%s1488_s1 + $0x180] sm:$0xff]   ;;  %v1144_v52 = vld [vmem:[%s1488_s1 + $0x148] sm:$0xff]   ;;  %v1148_v58 = vld [vmem:[%s1488_s1 + $0x150] sm:$0xff]  }
   0xe   :  { %1021 = vmatprep.subr.bf16.mxu1 %v1120_v13  ;;  %v181_v46 = vcombine.high %v1353_v43, %v1353_v43  ;;  %v202_v48 = vrot.slane %v180_v44, %v1349_v41  ;;  %v210_v51 = vcombine.high %v188_v45, %v188_v45  ;;  %v1145_v54 = vld [vmem:[%s1488_s1 + $0x1c8] sm:$0xff]   ;;  %v1149_v59 = vld [vmem:[%s1488_s1 + $0x1d0] sm:$0xff]   ;;  %v1152_v62 = vld [vmem:[%s1488_s1 + $0x158] sm:$0xff]  }
   0xf   :  { %v1146_v55 = vld [vmem:[%s1488_s1 + $0x108] sm:$0xff]   ;;  %v1150_v60 = vld [vmem:[%s1488_s1 + $0x110] sm:$0xff]   ;;  %v1153_v63 = vld [vmem:[%s1488_s1 + $0x1d8] sm:$0xff]  }
  0x10   :  { %1000 = vmatpush3.bf16.msra.mxu0 %v1121_v14  ;;  %v209_v50 = vrot.slane %v181_v46, %v1349_v41  ;;  %638 = vmatprep.mubr.bf16.mxu0 %v202_v48  ;;  %v212_v53 = vcombine.high %v202_v48, %v202_v48  ;;  %v1147_v57 = vld [vmem:[%s1488_s1 + $0x188] sm:$0xff]   ;;  %v1151_v61 = vld [vmem:[%s1488_s1 + $0x190] sm:$0xff]   ;;  %v1154_v0 = vld [vmem:[%s1488_s1 + $0x118] sm:$0xff]  }
  0x11   :  { %1022 = vmatpush3.bf16.msra.mxu1 %v1122_v15  ;;  %1001 = vmatprep.subr.bf16.mxu0 %v1123_v16  ;;  %v1155_v1 = vld [vmem:[%s1488_s1 + $0x198] sm:$0xff]   ;;  %v1156_v2 = vld [vmem:[%s1488_s1 + $0x160] sm:$0xff]   ;;  %v1160_v6 = vld [vmem:[%s1488_s1 + $0x168] sm:$0xff]  }
  0x12   :  { %1023 = vmatprep.subr.bf16.mxu1 %v1124_v17  ;;  %v213_v56 = vcombine.high %v209_v50, %v209_v50  ;;  %678 = vmatprep.mubr.bf16.mxu1 %v212_v53  ;;  %v1157_v3 = vld [vmem:[%s1488_s1 + $0x1e0] sm:$0xff]   ;;  %v1161_v7 = vld [vmem:[%s1488_s1 + $0x1e8] sm:$0xff]   ;;  %v1164_v10 = vld [vmem:[%s1488_s1 + $0x170] sm:$0xff]  }
  0x13   :  { %v1158_v4 = vld [vmem:[%s1488_s1 + $0x120] sm:$0xff]   ;;  %v1162_v8 = vld [vmem:[%s1488_s1 + $0x128] sm:$0xff]   ;;  %v1165_v11 = vld [vmem:[%s1488_s1 + $0x1f0] sm:$0xff]  }
  0x14   :  { %1002 = vmatpush3.bf16.msra.mxu0 %v1125_v18  ;;  %v1159_v5 = vld [vmem:[%s1488_s1 + $0x1a0] sm:$0xff]   ;;  %v1163_v9 = vld [vmem:[%s1488_s1 + $0x1a8] sm:$0xff]   ;;  %v1166_v12 = vld [vmem:[%s1488_s1 + $0x130] sm:$0xff]  }
  0x15   :  { %1024 = vmatpush3.bf16.msra.mxu1 %v1126_v19  ;;  %1003 = vmatprep.subr.bf16.mxu0 %v1127_v20 }
  0x16   :  { %1025 = vmatprep.subr.bf16.mxu1 %v1128_v21 }
  0x18   :  { %1004 = vmatpush3.bf16.msra.mxu0 %v1129_v22 }
  0x19   :  { %1026 = vmatpush3.bf16.msra.mxu1 %v1130_v23  ;;  %1005 = vmatprep.subr.bf16.mxu0 %v1131_v24 }
  0x1a   :  { %1027 = vmatprep.subr.bf16.mxu1 %v1132_v25 }
  0x1c   :  { %1006 = vmatpush3.bf16.msra.mxu0 %v1133_v26 }
  0x1d   :  { %1028 = vmatpush3.bf16.msra.mxu1 %v1134_v27  ;;  %1007 = vmatprep.subr.bf16.mxu0 %v1135_v29 }
  0x1e   :  { %1029 = vmatprep.subr.bf16.mxu1 %v1136_v30 }
  0x20   :  { %1008 = vmatpush3.bf16.msra.mxu0 %v1137_v31 }
  0x21   :  { %1030 = vmatpush3.bf16.msra.mxu1 %v1138_v32  ;;  %1037 = vmatprep.subr.bf16.mxu0 %v1140_v35 }
  0x22   :  { %1059 = vmatprep.subr.bf16.mxu1 %v1141_v38 }
  0x23   :  { %639 = vmatmul.mubr.bf16.vlgmr.msra.gmra.mrb[0].mxu0 %v188_v45 }
  0x24   :  { %1038 = vmatpush3.bf16.msra.mxu0 %v1142_v47  ;;  %679 = vmatmul.mubr.bf16.vlgmr.msra.gmra.mrb[0].mxu1 %v210_v51 }
  0x25   :  { %1039 = vmatprep.subr.bf16.mxu0 %v1144_v52  ;;  %1060 = vmatpush3.bf16.msra.mxu1 %v1143_v49 }
  0x26   :  { %718 = vmatprep.mubr.bf16.mxu0 %v209_v50  ;;  %1061 = vmatprep.subr.bf16.mxu1 %v1145_v54 }
  0x27   :  { %758 = vmatprep.mubr.bf16.mxu1 %v213_v56 }
  0x28   :  { %1040 = vmatpush3.bf16.msra.mxu0 %v1146_v55 }
  0x29   :  { %1041 = vmatprep.subr.bf16.mxu0 %v1148_v58  ;;  %1062 = vmatpush3.bf16.msra.mxu1 %v1147_v57 }
  0x2a   :  { %1063 = vmatprep.subr.bf16.mxu1 %v1149_v59 }
  0x2c   :  { %1042 = vmatpush3.bf16.msra.mxu0 %v1150_v60 }
  0x2d   :  { %1043 = vmatprep.subr.bf16.mxu0 %v1152_v62  ;;  %1064 = vmatpush3.bf16.msra.mxu1 %v1151_v61 }
  0x2e   :  { %1065 = vmatprep.subr.bf16.mxu1 %v1153_v63 }
  0x30   :  { %1044 = vmatpush3.bf16.msra.mxu0 %v1154_v0 }
  0x31   :  { %1045 = vmatprep.subr.bf16.mxu0 %v1156_v2  ;;  %1066 = vmatpush3.bf16.msra.mxu1 %v1155_v1 }
  0x32   :  { %1067 = vmatprep.subr.bf16.mxu1 %v1157_v3 }
  0x34   :  { %1046 = vmatpush3.bf16.msra.mxu0 %v1158_v4 }
  0x35   :  { %1047 = vmatprep.subr.bf16.mxu0 %v1160_v6  ;;  %1068 = vmatpush3.bf16.msra.mxu1 %v1159_v5 }
  0x36   :  { %1069 = vmatprep.subr.bf16.mxu1 %v1161_v7 }
  0x38   :  { %1048 = vmatpush3.bf16.msra.mxu0 %v1162_v8 }
  0x39   :  { %12 = vsyncpa [#allocation3], 0  ;;  %1049 = vmatprep.subr.bf16.mxu0 %v1164_v10  ;;  %v1168_v13 = vld [vmem:[%s1488_s1 + $0x178] sm:$0xff]   ;;  %1070 = vmatpush3.bf16.msra.mxu1 %v1163_v9  ;;  %v1167_v14 = vld [vmem:[%s1488_s1 + $0x1b0] sm:$0xff]   ;;  %v195_v17 = vrot.slane %v1353_v43, %v1349_v41  ;;  %v1201_v21 = vmov 0.0   ;;  %vm1202_vm0 = vmmov 0  }
  0x3a   :  { %1071 = vmatprep.subr.bf16.mxu1 %v1165_v11  ;;  %v1169_v15 = vld [vmem:[%s1488_s1 + $0x1f8] sm:$0xff]   ;;  %v1172_v20 = vld [vmem:[%s1490_s3] sm:$0xff]   ;;  %v1173_v22 = vld [vmem:[%s1490_s3 + $0x8] sm:$0xff]   ;;  %vm792_vm1 = vcmask 261120  }
  0x3b   :  { %v1170_v16 = vld [vmem:[%s1488_s1 + $0x138] sm:$0xff]   ;;  %v211_v19 = vcombine.high %v195_v17, %v195_v17  ;;  %v920_v24 = vld [vmem:[%s1489_s2] ss:$0 sm:$0xff]  ;;  %v1175_v52 = vld [vmem:[%s1492_s5 + $0x8] sm:$0xff]  }
  0x3c   :  { %1050 = vmatpush3.bf16.msra.mxu0 %v1166_v12  ;;  %v1171_v18 = vld [vmem:[%s1488_s1 + $0x1b8] sm:$0xff]   ;;  %v1174_v51 = vld [vmem:[%s1492_s5] sm:$0xff]   ;;  %s1203_s5 = smov [#allocation2]  }
  0x3d   :  { %1051 = vmatprep.subr.bf16.mxu0 %v1168_v13  ;;  %1072 = vmatpush3.bf16.msra.mxu1 %v1167_v14  ;;  %v985_v53 = vld [vmem:[%s1491_s4] ss:$0 sm:$0xff]  ;;  %s912_s24 = sshll.u32 %s1203_s5, 4  ;;  %s913_s24 = int_to_ptr.vmem [resolvable:$true] %s912_s24 }
  0x3e   :  { %1073 = vmatprep.subr.bf16.mxu1 %v1169_v15  ;;  %v989_v62 = vld [vmem:[%s1493_s6] ss:$0 sm:$0xff]  ;;  %s1176_s4 = scalar_lea.vmem %s913_s24, 32  ;;  %p1181_p1 = scmp.lt.s32.totalorder %s913_s24, %s913_s24 }
  0x3f   :  { %p1177_p0 = scmp.ne.s32.totalorder %s913_s24, %s1176_s4  ;;  %p1182_p2 = scmp.lt.s32.totalorder %s1176_s4, %s1176_s4 }
  0x40   :  { %1052 = vmatpush3.bf16.msra.mxu0 %v1170_v16 }
  0x41   :  { %1074 = vmatpush3.bf16.msra.mxu1 %v1171_v18  ;;  %1087 = vmatprep.subr.bf16.mxu0 %v1201_v21  ;;  %p1183_p3 = por %p1182_p2, %p1181_p1 }
  0x42   :  { %1095 = vmatprep.subr.bf16.mxu1 %v1201_v21 }
  0x43   :  { %719 = vmatmul.mubr.bf16.vlgmr.msra.gmra.mrb[4].mxu0 %v195_v17  ;;  %p1184_p4 = pnand %p1183_p3, %p1177_p0 }
  0x44   :  { %759 = vmatmul.mubr.bf16.vlgmr.msra.gmra.mrb[4].mxu1 %v211_v19  ;;  %1088 = vmatpush3.bf16.msra.mxu0 %v1172_v20 }
  0x45   :  { %1089 = vmatprep.subr.bf16.mxu0 %v1201_v21  ;;  %1091 = vmatprep.mubr.msk.bf16.mxu0 %vm1202_vm0, %v1201_v21 }
  0x46   :  { %1099 = vmatprep.mubr.msk.bf16.mxu1 %vm1202_vm0, %v1201_v21  ;;  %1096 = vmatpush3.bf16.msra.mxu1 %v1174_v51 }
  0x47   :  { %1097 = vmatprep.subr.bf16.mxu1 %v1201_v21 }
  0x48   :  { %1090 = vmatpush3.bf16.msra.mxu0 %v1173_v22 }
  0x4a   :  { %1098 = vmatpush3.bf16.msra.mxu1 %v1175_v52 }
  0xf6   :  { %v1009_v23 = vpop.f32.mrb[0].mxu0 }
  0xf7   :  { %v1010_v25 = vpop.f32.mrb[1].mxu0  ;;  %v1031_v26 = vpop.f32.mrb[0].mxu1 }
  0xf8   :  { %v1011_v27 = vadd.f32 %v1010_v25, %v1009_v23  ;;  %v1012_v28 = vpop.f32.mrb[2].mxu0  ;;  %v1032_v29 = vpop.f32.mrb[1].mxu1 }
  0xf9   :  { %v1013_v30 = vpop.f32.mrb[3].mxu0  ;;  %v1033_v32 = vadd.f32 %v1032_v29, %v1031_v26  ;;  %v1034_v33 = vpop.f32.mrb[2].mxu1 }
  0xfa   :  { %v641_v31 = vadd.f32 %v1011_v27, %v920_v24  ;;  %v1035_v34 = vpop.f32.mrb[3].mxu1 }
  0xfc   :  { %v681_v35 = vadd.f32 %v1033_v32, %v641_v31 }
 0x116   :  { %v1053_v36 = vpop.f32.mrb[4].mxu0 }
 0x117   :  { %v1054_v37 = vpop.f32.mrb[5].mxu0  ;;  %v1075_v38 = vpop.f32.mrb[4].mxu1 }
 0x118   :  { %v1055_v39 = vadd.f32 %v1054_v37, %v1053_v36  ;;  %v1056_v40 = vpop.f32.mrb[6].mxu0  ;;  %v1076_v41 = vpop.f32.mrb[5].mxu1 }
 0x119   :  { %v1057_v42 = vpop.f32.mrb[7].mxu0  ;;  %v1077_v44 = vadd.f32 %v1076_v41, %v1075_v38  ;;  %v1078_v45 = vpop.f32.mrb[6].mxu1 }
 0x11a   :  { %v721_v43 = vadd.f32 %v1055_v39, %v681_v35  ;;  %v1079_v46 = vpop.f32.mrb[7].mxu1 }
 0x11c   :  { %v761_v47 = vadd.f32 %v1077_v44, %v721_v43 }
 0x11e   :  { %v766_v48 = vmul.f32 0.2, %v761_v47 }
 0x120   :  { %v767_v49 = vmax.f32 %v761_v47, %v766_v48 }
 0x122   :  { %v773_v50 = vpack.c.bf16 %v767_v49, %v767_v49 }
 0x124   :  { %1092 = vmatmul.mubr.msk.bf16.vlgmr.msra.gmra.mrb[8].mxu0 %vm792_vm1, %v773_v50 }
 0x1f7   :  { %v830_v54 = vpop.f32.mrb[8].mxu0 }
 0x1f8   :  { %v831_v55 = vadd.f32 %v985_v53, %v830_v54  ;;  %v1093_v56 = vpop.f32.mrb[9].mxu0 }
 0x1f9   :  { %v833_v57 = vpop.f32.mrb[10].mxu0 }
 0x1fa   :  { %v836_v58 = vmul.f32 0.2, %v831_v55  ;;  %v1094_v59 = vpop.f32.mrb[11].mxu0 }
 0x1fc   :  { %v837_v60 = vmax.f32 %v831_v55, %v836_v58 }
 0x1fe   :  { %v843_v61 = vpack.c.bf16 %v837_v60, %v837_v60 }
 0x200   :  { %1100 = vmatmul.mubr.msk.bf16.vlgmr.msra.gmra.mrb[8].mxu1 %vm792_vm1, %v843_v61 }
 0x2d3   :  { %v899_v63 = vpop.f32.mrb[8].mxu1 }
 0x2d4   :  { %v900_v0 = vadd.f32 %v989_v62, %v899_v63  ;;  %v1101_v1 = vpop.f32.mrb[9].mxu1 }
 0x2d5   :  { %v902_v2 = vpop.f32.mrb[10].mxu1 }
 0x2d6   :  { %905 = vst [vmem:[#allocation2] sm:$0x3] %v900_v0  ;;  %v1102_v3 = vpop.f32.mrb[11].mxu1 }
 0x2d7   :  { %1187 = shalt.err (!%p1184_p4)
}
 0x2d8   :  { %s1188_s6 = scalar_lea.hbm %s1494_s7, 32 }
 0x2d9   :  { %p1189_p5 = scmp.ne.s32.totalorder %s1494_s7, %s1188_s6  ;;  %p1192_p6 = scmp.lt.u32.totalorder %s1188_s6, %s1494_s7 }
 0x2db   :  { %p1194_p7 = pnand %p1192_p6, %p1189_p5 }
 0x2dd   :  { %1197 = shalt.err (!%p1194_p7)
}
 0x2de   :  { %915 = dma.vmem_to_hbm [thread:$0]  %s913_s24, 32, %s1494_s7, [#allocation3]  }
 0x2df   :  { %1198 = dma.done.wait [#allocation3], 32  }
 0x2e0   :  { %1199 = vsyncadd [#allocation3], 4294967264 }
 0x2e1   :  { %919 = vsyncpa [#allocation3], 1 }

</bundles_post_ra>
